<compile_context>
chip_gen: v6e
topology: v6e:2x2x1
jax: 0.10.0
libtpu: 0.0.40
codegen_flags: <defaults>
</compile_context>

<pallas_src>
import jax
import jax.numpy as jnp
from jax import lax
from jax.experimental import pallas as pl
from jax.experimental.pallas import tpu as pltpu

# ----- synthetic model configuration (small shapes) -----
IN_FEATURES = 32        # flat input features
CORE_OUT_DIM = 16       # nn_model_out_dim (real hidden width)
C_CARDS = (3, 4)        # concept cardinalities (c_cards)
C_TOTAL = sum(C_CARDS)
N_CONCEPTS = len(C_CARDS)
N_BG = 16               # background set size
BATCH = 16

LANE = 128
HPAD = LANE             # hidden width padded to 128 lanes (lane-dense MLP)
CPAD = LANE             # concept-logit lanes, padded to 128
NPAD = LANE             # background/time lanes, padded to 128
NEG_BIG = -1e30
MAX_TB = 1024           # batch-tile cap; per-step working set still << scoped VMEM


def _round_up(n, m):
    return ((n + m - 1) // m) * m


def _choose_batch_tile(B):
    # Largest tile (amortize ~0.35us/step overhead, raise MXU M-occupancy) while
    # keeping >=2 grid steps for moderate B so the "parallel" axis can shard
    # across v7x's two TensorCores.  B <= 8 is a single minimum (8-row) tile.
    if B <= 8:
        return 8
    return min(_round_up((B + 1) // 2, 8), MAX_TB)


# ---------------------------------------------------------------------------
# Fused kernel: core MLP -> concept heads -> per-concept softmax -> Beran sf
# ---------------------------------------------------------------------------
def survbn_kernel(x_ref, wc_ref, bc_ref, wh_ref, bh_ref,
                  segsum_ref, oht_ref, bg_ref, ge_ref, out_ref):
    f32 = jnp.float32

    # --- ConceptsClf: shared core (Linear + ReLU) + fused zero-padded heads ---
    h = jnp.dot(x_ref[...], wc_ref[...], preferred_element_type=f32) + bc_ref[...]
    h = jnp.maximum(h, 0.0)                                      # (TB, HPAD)
    logits = jnp.dot(h, wh_ref[...], preferred_element_type=f32) + bh_ref[...]
    out_ref[:, :CPAD] = logits                                   # lane-dense store

    # --- per-concept softmax: one row max, one exp, one segment-sum matmul ---
    mx = jnp.max(logits, axis=-1, keepdims=True)                 # (TB, 1)
    e = jnp.exp(logits - mx)                                     # (TB, CPAD)
    den = jnp.dot(e, segsum_ref[...], preferred_element_type=f32)
    x_proba = e / jnp.maximum(den, 1e-30)                        # per-concept softmax

    # --- Beran estimator (l2 kernel) ---
    # ||x||^2 / ||onehot||^2 are row/col constants -> cancel in the softmax over
    # the background; the softmax normalization itself cancels inside
    # frac = w_j / sum_{k>=j} w_k, so unnormalized exp(2*cross) weights are used.
    cross = jnp.dot(x_proba.astype(jnp.bfloat16), oht_ref[...],
                    preferred_element_type=f32)                  # (TB, NPAD)
    lw = 2.0 * cross + bg_ref[1:2, :]                            # pad cols get -1e30
    w = jnp.exp(lw - jnp.max(lw, axis=-1, keepdims=True))        # (TB, NPAD)

    # risk set: denom_j = sum_{k>=j} w_k  (suffix-sum mask, f32 MXU pass)
    denom = jnp.dot(w, ge_ref[...], preferred_element_type=f32)
    frac = jnp.minimum(w / jnp.maximum(denom, 1e-30), 1.0)       # exact divide
    d = bg_ref[0:1, :]                                           # 0 on censored/pad cols
    factor = jnp.maximum(1.0 - d * frac, 1e-30)
    # prefix sum over sorted times: log_sf = log(factor) @ ge^T  (le == ge^T)
    log_sf = lax.dot_general(jnp.log(factor), ge_ref[...],
                             dimension_numbers=(((1,), (1,)), ((), ())),
                             preferred_element_type=f32)
    out_ref[:, CPAD:] = jnp.exp(log_sf)                          # survival function


# ---------------------------------------------------------------------------
# Wrapper: one pallas_call, batch gridded ("parallel"), constants VMEM-resident
# ---------------------------------------------------------------------------
def surv_bn_forward(x, params, bg):
    B = x.shape[0]
    TB = _choose_batch_tile(B)
    Bp = _round_up(B, TB)
    if Bp != B:
        x = jnp.pad(x, ((0, Bp - B), (0, 0)))
    grid = (Bp // TB,)

    const = lambda i: (0, 0)
    slab = pl.pallas_call(
        survbn_kernel,
        out_shape=jax.ShapeDtypeStruct((Bp, CPAD + NPAD), jnp.float32),
        grid=grid,
        in_specs=[
            pl.BlockSpec((TB, IN_FEATURES), lambda i: (i, 0)),     # x
            pl.BlockSpec((IN_FEATURES, HPAD), const),              # w_core (padded)
            pl.BlockSpec((1, HPAD), const),                        # b_core
            pl.BlockSpec((HPAD, CPAD), const),                     # w_head (padded)
            pl.BlockSpec((1, CPAD), const),                        # b_head
            pl.BlockSpec((CPAD, CPAD), const),                     # segment-sum matrix
            pl.BlockSpec((CPAD, NPAD), const),                     # onehot^T (bf16)
            pl.BlockSpec((8, NPAD), const),                        # bg consts (d, pad bias)
            pl.BlockSpec((NPAD, NPAD), const),                     # ge suffix-sum mask
        ],
        out_specs=pl.BlockSpec((TB, CPAD + NPAD), lambda i: (i, 0)),
        compiler_params=pltpu.CompilerParams(
            dimension_semantics=("parallel",)),   # megacore-shardable on v7x
        # NOTE: set vmem_limit_bytes explicitly (and pad NPAD to 256 on v6e/v7x)
        # once N_BG grows; at these shapes the defaults have huge headroom.
    )(x, params["w_core"], params["b_core"],
      params["w_head"], params["b_head"],
      bg["segsum"], bg["onehot_T"], bg["bg_consts"], bg["ge_mask"])

    logits = slab[:B, :CPAD]
    sf = slab[:B, CPAD:]
    # E_T = T_bg[0] + sum_j sf_j * (T_bg[j+1] - T_bg[j]); tdiff pads/last are 0.
    E_T = bg["t0"] + sf @ bg["tdiff_pad"]

    c_list = []
    off = 0
    for card in C_CARDS:                      # raw per-concept logits, as in PyTorch
        c_list.append(logits[:, off:off + card])
        off += card
    return E_T, c_list


# ---------------------------------------------------------------------------
# Parameter init and background setup (_set_background), padded / pre-baked
# ---------------------------------------------------------------------------
def init_params(key):
    k1, k2 = jax.random.split(key, 2)
    w_core = (jax.random.normal(k1, (IN_FEATURES, CORE_OUT_DIM), jnp.float32)
              / jnp.sqrt(IN_FEATURES))
    w_head = (jax.random.normal(k2, (CORE_OUT_DIM, C_TOTAL), jnp.float32)
              / jnp.sqrt(CORE_OUT_DIM))
    # zero-pad hidden width to 128 lanes and heads to 128 output lanes so both
    # MLP matmuls run with full-lane layouts (padded rows/cols contribute 0).
    w_core_pad = jnp.zeros((IN_FEATURES, HPAD), jnp.float32).at[:, :CORE_OUT_DIM].set(w_core)
    b_core_pad = jnp.zeros((1, HPAD), jnp.float32)
    w_head_pad = jnp.zeros((HPAD, CPAD), jnp.float32).at[:CORE_OUT_DIM, :C_TOTAL].set(w_head)
    b_head_pad = jnp.zeros((1, CPAD), jnp.float32)
    return dict(w_core=w_core_pad, b_core=b_core_pad,
                w_head=w_head_pad, b_head=b_head_pad)


def make_background(key):
    kc, kt, kd = jax.random.split(key, 3)
    kcs = jax.random.split(kc, N_CONCEPTS)
    C_bg = jnp.stack(
        [jax.random.randint(k, (N_BG,), 0, card) for k, card in zip(kcs, C_CARDS)],
        axis=1)                                                  # (N, n_concepts)
    T = jax.random.uniform(kt, (N_BG,), minval=0.1, maxval=10.0)
    D = (jax.random.uniform(kd, (N_BG,)) < 0.7).astype(jnp.float32)

    # _set_background: sort everything by time
    order = jnp.argsort(T)
    T_bg, C_bg, D_bg = T[order], C_bg[order], D[order]

    onehot = jnp.concatenate(
        [jax.nn.one_hot(C_bg[:, i], card, dtype=jnp.float32)
         for i, card in enumerate(C_CARDS)], axis=-1)            # (N, C_TOTAL)
    # 0/1 matrix, exactly representable in bf16 -> bf16 MXU pass for `cross`.
    onehot_T = (jnp.zeros((CPAD, NPAD), jnp.float32)
                .at[:C_TOTAL, :N_BG].set(onehot.T)).astype(jnp.bfloat16)

    # packed background constants, 128-lane rows:
    #   row0 = event indicator d (0 on pad lanes), row1 = pad-column bias
    bg_consts = jnp.zeros((8, NPAD), jnp.float32)
    bg_consts = bg_consts.at[0, :N_BG].set(D_bg)
    bg_consts = bg_consts.at[1, N_BG:].set(NEG_BIG)

    # block-diagonal segment-sum matrix for the fused per-concept softmax:
    # S[k,l] = 1 iff lanes k,l are in the same concept; identity on pad lanes so
    # pad denominators are never 0 (no inf/NaN reaching the next matmul).
    segsum = jnp.eye(CPAD, dtype=jnp.float32)
    off = 0
    for card in C_CARDS:
        segsum = segsum.at[off:off + card, off:off + card].set(1.0)
        off += card

    # suffix-sum (ge) mask only; the prefix-sum mask is ge^T and is applied
    # in-kernel via dot_general on the rhs' dim 1 -> no second mask constant.
    r = jnp.arange(NPAD)
    ge_mask = (r[:, None] >= r[None, :]).astype(jnp.float32)

    # expected-time pieces used in the wrapper (kept out of the kernel so the
    # output slab stays [logits | sf] with no E_T broadcast lanes).
    tdiff = T_bg[1:] - T_bg[:-1]
    tdiff_pad = jnp.zeros((NPAD,), jnp.float32).at[:N_BG - 1].set(tdiff)
    t0 = T_bg[0].astype(jnp.float32)

    return dict(onehot_T=onehot_T, bg_consts=bg_consts, segsum=segsum,
                ge_mask=ge_mask, tdiff_pad=tdiff_pad, t0=t0)


if __name__ == "__main__":
    key = jax.random.PRNGKey(0)
    kx, kp, kb = jax.random.split(key, 3)

    x = jax.random.normal(kx, (BATCH, IN_FEATURES), jnp.float32)
    params = init_params(kp)
    bg = make_background(kb)

    fwd = jax.jit(surv_bn_forward)
    E_T, c = fwd(x, params, bg)
    jax.block_until_ready(E_T)
    for ci in c:
        jax.block_until_ready(ci)

    assert E_T.shape == (BATCH,)
    assert [tuple(ci.shape) for ci in c] == [(BATCH, card) for card in C_CARDS]
    assert bool(jnp.all(jnp.isfinite(E_T)))
    for ci in c:
        assert bool(jnp.all(jnp.isfinite(ci)))
    print("KERNEL_OK")
</pallas_src>

<mosaic_0001>
module attributes {stable_mosaic.version = 11 : i64} {
  func.func @survbn_kernel(%arg0: i32, %arg1: memref<8x32xf32, #tpu.memory_space<vmem>>, %arg2: memref<32x128xf32, #tpu.memory_space<vmem>>, %arg3: memref<1x128xf32, #tpu.memory_space<vmem>>, %arg4: memref<128x128xf32, #tpu.memory_space<vmem>>, %arg5: memref<1x128xf32, #tpu.memory_space<vmem>>, %arg6: memref<128x128xf32, #tpu.memory_space<vmem>>, %arg7: memref<128x128xbf16, #tpu.memory_space<vmem>>, %arg8: memref<8x128xf32, #tpu.memory_space<vmem>>, %arg9: memref<128x128xf32, #tpu.memory_space<vmem>>, %arg10: memref<8x256xf32, #tpu.memory_space<vmem>>) attributes {dimension_semantics = [#tpu.dimension_semantics<parallel>], iteration_bounds = array<i64: 2>, scalar_prefetch = 0 : i64, scratch_operands = 0 : i64, tpu.core_type = #tpu.core_type<tc>, window_params = [{transform_indices = @transform_0, window_bounds = array<i64: 8, 32>}, {pipeline_mode = #tpu.pipeline_mode<synchronous>, transform_indices = @transform_1, window_bounds = array<i64: 32, 128>}, {pipeline_mode = #tpu.pipeline_mode<synchronous>, transform_indices = @transform_2, window_bounds = array<i64: 1, 128>}, {pipeline_mode = #tpu.pipeline_mode<synchronous>, transform_indices = @transform_3, window_bounds = array<i64: 128, 128>}, {pipeline_mode = #tpu.pipeline_mode<synchronous>, transform_indices = @transform_4, window_bounds = array<i64: 1, 128>}, {pipeline_mode = #tpu.pipeline_mode<synchronous>, transform_indices = @transform_5, window_bounds = array<i64: 128, 128>}, {pipeline_mode = #tpu.pipeline_mode<synchronous>, transform_indices = @transform_6, window_bounds = array<i64: 128, 128>}, {pipeline_mode = #tpu.pipeline_mode<synchronous>, transform_indices = @transform_7, window_bounds = array<i64: 8, 128>}, {pipeline_mode = #tpu.pipeline_mode<synchronous>, transform_indices = @transform_8, window_bounds = array<i64: 128, 128>}, {transform_indices = @transform_9, window_bounds = array<i64: 8, 256>}]} {
    %c0 = arith.constant 0 : index
    %c0_0 = arith.constant 0 : index
    %0 = vector.load %arg1[%c0, %c0_0] : memref<8x32xf32, #tpu.memory_space<vmem>>, vector<8x32xf32>
    %c0_1 = arith.constant 0 : index
    %c0_2 = arith.constant 0 : index
    %1 = vector.load %arg2[%c0_1, %c0_2] : memref<32x128xf32, #tpu.memory_space<vmem>>, vector<32x128xf32>
    %cst = arith.constant dense<0.000000e+00> : vector<8x128xf32>
    %2 = tpu.matmul %0, %1, %cst {dimension_numbers = #tpu.dot_dimension_numbers<[1], [0], [0], [1], [0, 0, 1, 1], [], []>} : vector<8x32xf32>, vector<32x128xf32>, vector<8x128xf32> -> vector<8x128xf32>
    %c0_3 = arith.constant 0 : index
    %c0_4 = arith.constant 0 : index
    %3 = vector.load %arg3[%c0_3, %c0_4] : memref<1x128xf32, #tpu.memory_space<vmem>>, vector<1x128xf32>
    %4 = vector.broadcast %3 : vector<1x128xf32> to vector<8x128xf32>
    %5 = arith.addf %2, %4 : vector<8x128xf32>
    %cst_5 = arith.constant 0.000000e+00 : f32
    %6 = vector.broadcast %cst_5 : f32 to vector<8x128xf32>
    %7 = arith.maximumf %5, %6 : vector<8x128xf32>
    %c0_6 = arith.constant 0 : index
    %c0_7 = arith.constant 0 : index
    %8 = vector.load %arg4[%c0_6, %c0_7] : memref<128x128xf32, #tpu.memory_space<vmem>>, vector<128x128xf32>
    %cst_8 = arith.constant dense<0.000000e+00> : vector<8x128xf32>
    %9 = tpu.matmul %7, %8, %cst_8 {dimension_numbers = #tpu.dot_dimension_numbers<[1], [0], [0], [1], [0, 0, 1, 1], [], []>} : vector<8x128xf32>, vector<128x128xf32>, vector<8x128xf32> -> vector<8x128xf32>
    %c0_9 = arith.constant 0 : index
    %c0_10 = arith.constant 0 : index
    %10 = vector.load %arg5[%c0_9, %c0_10] : memref<1x128xf32, #tpu.memory_space<vmem>>, vector<1x128xf32>
    %11 = vector.broadcast %10 : vector<1x128xf32> to vector<8x128xf32>
    %12 = arith.addf %9, %11 : vector<8x128xf32>
    %c0_11 = arith.constant 0 : index
    %c0_12 = arith.constant 0 : index
    %13 = vector.load %arg10[%c0_11, %c0_12] : memref<8x256xf32, #tpu.memory_space<vmem>>, vector<8x128xf32>
    tpu.vector_store %arg10[%c0_11, %c0_12], %12 {strides = array<i32>} : memref<8x256xf32, #tpu.memory_space<vmem>>, vector<8x128xf32>,
    %cst_13 = arith.constant dense<0xFF800000> : vector<8xf32>
    %14 = vector.multi_reduction <maximumf>, %12, %cst_13 [1] : vector<8x128xf32> to vector<8xf32>
    %15 = vector.shape_cast %14 : vector<8xf32> to vector<8x1xf32>
    %16 = vector.broadcast %15 : vector<8x1xf32> to vector<8x128xf32>
    %17 = arith.subf %12, %16 : vector<8x128xf32>
    %18 = math.exp %17 : vector<8x128xf32>
    %c0_14 = arith.constant 0 : index
    %c0_15 = arith.constant 0 : index
    %19 = vector.load %arg6[%c0_14, %c0_15] : memref<128x128xf32, #tpu.memory_space<vmem>>, vector<128x128xf32>
    %cst_16 = arith.constant dense<0.000000e+00> : vector<8x128xf32>
    %20 = tpu.matmul %18, %19, %cst_16 {dimension_numbers = #tpu.dot_dimension_numbers<[1], [0], [0], [1], [0, 0, 1, 1], [], []>} : vector<8x128xf32>, vector<128x128xf32>, vector<8x128xf32> -> vector<8x128xf32>
    %cst_17 = arith.constant 1.000000e-30 : f32
    %21 = vector.broadcast %cst_17 : f32 to vector<8x128xf32>
    %22 = arith.maximumf %20, %21 : vector<8x128xf32>
    %23 = arith.divf %18, %22 : vector<8x128xf32>
    %24 = arith.truncf %23 : vector<8x128xf32> to vector<8x128xbf16>
    %c0_18 = arith.constant 0 : index
    %c0_19 = arith.constant 0 : index
    %25 = vector.load %arg7[%c0_18, %c0_19] : memref<128x128xbf16, #tpu.memory_space<vmem>>, vector<128x128xbf16>
    %cst_20 = arith.constant dense<0.000000e+00> : vector<8x128xf32>
    %26 = tpu.matmul %24, %25, %cst_20 {dimension_numbers = #tpu.dot_dimension_numbers<[1], [0], [0], [1], [0, 0, 1, 1], [], []>} : vector<8x128xbf16>, vector<128x128xbf16>, vector<8x128xf32> -> vector<8x128xf32>
    %cst_21 = arith.constant 2.000000e+00 : f32
    %27 = vector.broadcast %cst_21 : f32 to vector<8x128xf32>
    %28 = arith.mulf %27, %26 : vector<8x128xf32>
    %c1 = arith.constant 1 : index
    %c0_22 = arith.constant 0 : index
    %29 = vector.load %arg8[%c1, %c0_22] : memref<8x128xf32, #tpu.memory_space<vmem>>, vector<1x128xf32>
    %30 = vector.broadcast %29 : vector<1x128xf32> to vector<8x128xf32>
    %31 = arith.addf %28, %30 : vector<8x128xf32>
    %cst_23 = arith.constant dense<0xFF800000> : vector<8xf32>
    %32 = vector.multi_reduction <maximumf>, %31, %cst_23 [1] : vector<8x128xf32> to vector<8xf32>
    %33 = vector.shape_cast %32 : vector<8xf32> to vector<8x1xf32>
    %34 = vector.broadcast %33 : vector<8x1xf32> to vector<8x128xf32>
    %35 = arith.subf %31, %34 : vector<8x128xf32>
    %36 = math.exp %35 : vector<8x128xf32>
    %c0_24 = arith.constant 0 : index
    %c0_25 = arith.constant 0 : index
    %37 = vector.load %arg9[%c0_24, %c0_25] : memref<128x128xf32, #tpu.memory_space<vmem>>, vector<128x128xf32>
    %cst_26 = arith.constant dense<0.000000e+00> : vector<8x128xf32>
    %38 = tpu.matmul %36, %37, %cst_26 {dimension_numbers = #tpu.dot_dimension_numbers<[1], [0], [0], [1], [0, 0, 1, 1], [], []>} : vector<8x128xf32>, vector<128x128xf32>, vector<8x128xf32> -> vector<8x128xf32>
    %cst_27 = arith.constant 1.000000e-30 : f32
    %39 = vector.broadcast %cst_27 : f32 to vector<8x128xf32>
    %40 = arith.maximumf %38, %39 : vector<8x128xf32>
    %41 = arith.divf %36, %40 : vector<8x128xf32>
    %cst_28 = arith.constant 1.000000e+00 : f32
    %42 = vector.broadcast %cst_28 : f32 to vector<8x128xf32>
    %43 = arith.minimumf %41, %42 : vector<8x128xf32>
    %c0_29 = arith.constant 0 : index
    %c0_30 = arith.constant 0 : index
    %44 = vector.load %arg8[%c0_29, %c0_30] : memref<8x128xf32, #tpu.memory_space<vmem>>, vector<1x128xf32>
    %45 = vector.broadcast %44 : vector<1x128xf32> to vector<8x128xf32>
    %46 = arith.mulf %45, %43 : vector<8x128xf32>
    %cst_31 = arith.constant 1.000000e+00 : f32
    %47 = vector.broadcast %cst_31 : f32 to vector<8x128xf32>
    %48 = arith.subf %47, %46 : vector<8x128xf32>
    %cst_32 = arith.constant 1.000000e-30 : f32
    %49 = vector.broadcast %cst_32 : f32 to vector<8x128xf32>
    %50 = arith.maximumf %48, %49 : vector<8x128xf32>
    %51 = math.log %50 : vector<8x128xf32>
    %c0_33 = arith.constant 0 : index
    %c0_34 = arith.constant 0 : index
    %52 = vector.load %arg9[%c0_33, %c0_34] : memref<128x128xf32, #tpu.memory_space<vmem>>, vector<128x128xf32>
    %cst_35 = arith.constant dense<0.000000e+00> : vector<8x128xf32>
    %53 = tpu.matmul %51, %52, %cst_35 {dimension_numbers = #tpu.dot_dimension_numbers<[1], [1], [0], [0], [0, 0, 1, 0], [], []>} : vector<8x128xf32>, vector<128x128xf32>, vector<8x128xf32> -> vector<8x128xf32>
    %54 = math.exp %53 : vector<8x128xf32>
    %c0_36 = arith.constant 0 : index
    %c128 = arith.constant 128 : index
    %55 = vector.load %arg10[%c0_36, %c128] : memref<8x256xf32, #tpu.memory_space<vmem>>, vector<8x128xf32>
    tpu.vector_store %arg10[%c0_36, %c128], %54 {strides = array<i32>} : memref<8x256xf32, #tpu.memory_space<vmem>>, vector<8x128xf32>,
    return
  }
  func.func @transform_0(%arg0: i32) -> (i32, i32) {
    %c0_i32 = arith.constant 0 : i32
    %c0_i32_0 = arith.constant 0 : i32
    return %arg0, %c0_i32 : i32, i32
  }
  func.func @transform_1(%arg0: i32) -> (i32, i32) {
    %c0_i32 = arith.constant 0 : i32
    %c0_i32_0 = arith.constant 0 : i32
    %c0_i32_1 = arith.constant 0 : i32
    return %c0_i32, %c0_i32_0 : i32, i32
  }
  func.func @transform_2(%arg0: i32) -> (i32, i32) {
    %c0_i32 = arith.constant 0 : i32
    %c0_i32_0 = arith.constant 0 : i32
    %c0_i32_1 = arith.constant 0 : i32
    return %c0_i32, %c0_i32_0 : i32, i32
  }
  func.func @transform_3(%arg0: i32) -> (i32, i32) {
    %c0_i32 = arith.constant 0 : i32
    %c0_i32_0 = arith.constant 0 : i32
    %c0_i32_1 = arith.constant 0 : i32
    return %c0_i32, %c0_i32_0 : i32, i32
  }
  func.func @transform_4(%arg0: i32) -> (i32, i32) {
    %c0_i32 = arith.constant 0 : i32
    %c0_i32_0 = arith.constant 0 : i32
    %c0_i32_1 = arith.constant 0 : i32
    return %c0_i32, %c0_i32_0 : i32, i32
  }
  func.func @transform_5(%arg0: i32) -> (i32, i32) {
    %c0_i32 = arith.constant 0 : i32
    %c0_i32_0 = arith.constant 0 : i32
    %c0_i32_1 = arith.constant 0 : i32
    return %c0_i32, %c0_i32_0 : i32, i32
  }
  func.func @transform_6(%arg0: i32) -> (i32, i32) {
    %c0_i32 = arith.constant 0 : i32
    %c0_i32_0 = arith.constant 0 : i32
    %c0_i32_1 = arith.constant 0 : i32
    return %c0_i32, %c0_i32_0 : i32, i32
  }
  func.func @transform_7(%arg0: i32) -> (i32, i32) {
    %c0_i32 = arith.constant 0 : i32
    %c0_i32_0 = arith.constant 0 : i32
    %c0_i32_1 = arith.constant 0 : i32
    return %c0_i32, %c0_i32_0 : i32, i32
  }
  func.func @transform_8(%arg0: i32) -> (i32, i32) {
    %c0_i32 = arith.constant 0 : i32
    %c0_i32_0 = arith.constant 0 : i32
    %c0_i32_1 = arith.constant 0 : i32
    return %c0_i32, %c0_i32_0 : i32, i32
  }
  func.func @transform_9(%arg0: i32) -> (i32, i32) {
    %c0_i32 = arith.constant 0 : i32
    %c0_i32_0 = arith.constant 0 : i32
    return %arg0, %c0_i32 : i32, i32
  }
}

</mosaic_0001>

<bundles_post_ra>
// kernel: surv_bn_forward.1
= control target key start
LH: loop header
LB: loop body
LE: loop exit
PB: predicated region body
PF: predicated region fallthrough
CT: control target
= control target key end

     0   :  { %14 = vsyncpa [#allocation3], 0  ;;  %s1947_s0 = inlined_call_operand.vmem [shape: f32[16,32], index: 0, kind: input, shape index: {}]   ;;  %s1948_s1 = inlined_call_operand.hbm [shape: f32[32,128], index: 1, kind: input, shape index: {}]   ;;  %s1949_s2 = inlined_call_operand.vmem [shape: f32[1,128], index: 2, kind: input, shape index: {}]   ;;  %s1950_s3 = inlined_call_operand.hbm [shape: f32[128,128], index: 3, kind: input, shape index: {}]   ;;  %s1951_s4 = inlined_call_operand.vmem [shape: f32[1,128], index: 4, kind: input, shape index: {}]   ;;  %s1952_s5 = inlined_call_operand.hbm [shape: f32[128,128], index: 5, kind: input, shape index: {}]   ;;  %s1953_s6 = inlined_call_operand.hbm [shape: bf16[128,128], index: 6, kind: input, shape index: {}]   ;;  %s1954_s7 = inlined_call_operand.hbm [shape: f32[8,128], index: 7, kind: input, shape index: {}]   ;;  %s1955_s8 = inlined_call_operand.hbm [shape: f32[128,128], index: 8, kind: input, shape index: {}]   ;;  %s1956_s9 = inlined_call_operand.vmem [shape: f32[16,256], index: 9, kind: output, shape index: {}]  }
   0x1   :  { %15 = vsyncpa [#allocation5], 0 }
   0x2   :  { %16 = vsyncpa [#allocation8], 0 }
   0x3   :  { %17 = vsyncpa [#allocation11], 0  ;;  %s1723_s30 = smov 0  }
   0x4 LB: > { %s1729_s10 = sadd.s32 4294967295, %s1659_s30   ;;  %p1099_p0 = scmp.ge.s32.totalorder %s1659_s30, 1  ;;  %s1659_s30 = sphi %s1723_s30, %s23_s30  }
   0x5   : > { %p248_p1 = scmp.lt.s32.totalorder %s1659_s30, 3  ;;  %p1957_p2 = scmp.eq.s32.totalorder %s1729_s10, 0 }
   0x6   : > { %s1661_s12 = smov [#allocation4]   ;;  %s1662_s14 = smov [#allocation7]  }
   0x7   : > { %p1734_p3 = pnand %p1099_p0, %p248_p1  ;;  %s276_s13 = sshll.u32 %s1661_s12, 4  ;;  %s277_s13 = int_to_ptr.vmem [resolvable:$true] %s276_s13 }
   0x8   : > { %s305_s15 = sshll.u32 %s1662_s14, 4  ;;  %s1663_s17 = smov [#allocation2]   ;;  %s1740_s15 = int_to_ptr.vmem [resolvable:$true] %s305_s15 }
   0x9   : > { %s1959_s11 = scalar_select %p1734_p3, 1, 0 }
   0xa   : > { %p1410_p4 = pneg %p1734_p3  ;;  %s1748_s18 = sshll.u32 %s1663_s17, 4  ;;  %s261_s18 = int_to_ptr.vmem [resolvable:$true] %s1748_s18 }
   0xb   : > { %s1492_s20 = scalar_lea.vmem %s277_s13, 2048  ;;  %p1500_p10 = scmp.lt.s32.totalorder %s277_s13, %s277_s13 }
   0xc   : > { %p1744_p5 = pnand %p1957_p2, %p1410_p4  ;;  %p1493_p7 = scmp.ne.s32.totalorder %s277_s13, %s1492_s20 }
   0xd   : > { %p1501_p11 = scmp.lt.s32.totalorder %s1492_s20, %s1492_s20 }
   0xe   : > { %p1752_p6 = pneg %p1744_p5 }
   0xf   : > { %p1502_p12 = por %p1501_p11, %p1500_p10 }
  0x10   : > { %p1495_p8 = pnand %p1493_p7, %p1752_p6 }
  0x12   : > { %p1496_p9 = pneg %p1495_p8 }
  0x14   : > { %p1503_p13 = pnand %p1502_p12, %p1496_p9 }
  0x16   : > { %1506 = shalt.err (!%p1503_p13)
}
  0x17   : > { %s1664_s21 = smov 128   ;;  %s1665_s22 = smov 8  }
  0x18   : > { %1416 = dma.hbm_to_vmem [thread:$0]  (!%p1744_p5), %s1950_s3, 2048, %s277_s13, [#allocation5], %s1664_s21, %s1664_s21, %s1665_s22  }
  0x19   : > { %s1518_s25 = scalar_lea.vmem %s1740_s15, 1024  ;;  %p1526_p7 = scmp.lt.s32.totalorder %s1740_s15, %s1740_s15 }
  0x1a   : > { %p1519_p0 = scmp.ne.s32.totalorder %s1740_s15, %s1518_s25  ;;  %p1527_p8 = scmp.lt.s32.totalorder %s1518_s25, %s1518_s25 }
  0x1c   : > { %p1521_p1 = pnand %p1519_p0, %p1752_p6  ;;  %p1528_p9 = por %p1527_p8, %p1526_p7 }
  0x1e   : > { %p1522_p4 = pneg %p1521_p1 }
  0x20   : > { %p1529_p10 = pnand %p1528_p9, %p1522_p4 }
  0x22   : > { %1532 = shalt.err (!%p1529_p10)
}
  0x23   : > { %s1666_s26 = smov 64   ;;  %s1667_s27 = smov 4  }
  0x24   : > { %1422 = dma.hbm_to_vmem [thread:$0]  (!%p1744_p5), %s1953_s6, 1024, %s1740_s15, [#allocation8], %s1666_s26, %s1666_s26, %s1667_s27  }
  0x25   : > { %s1668_s12 = smov [#allocation6]   ;;  %s1544_s14 = scalar_lea.vmem %s261_s18, 512 }
  0x26   : > { %s292_s13 = sshll.u32 %s1668_s12, 4  ;;  %p1545_p11 = scmp.ne.s32.totalorder %s261_s18, %s1544_s14  ;;  %s293_s13 = int_to_ptr.vmem [resolvable:$true] %s292_s13 }
  0x27   : > { %p1552_p0 = scmp.lt.s32.totalorder %s261_s18, %s261_s18  ;;  %p1553_p1 = scmp.lt.s32.totalorder %s1544_s14, %s1544_s14 }
  0x28   : > { %p1547_p12 = pnand %p1545_p11, %p1752_p6 }
  0x29   : > { %p1554_p4 = por %p1553_p1, %p1552_p0 }
  0x2a   : > { %p1548_p13 = pneg %p1547_p12 }
  0x2c   : > { %p1555_p7 = pnand %p1554_p4, %p1548_p13 }
  0x2e   : > { %1558 = shalt.err (!%p1555_p7)
}
  0x2f   : > { %1413 = dma.hbm_to_vmem [thread:$0]  (!%p1744_p5), %s1948_s1, 512, %s261_s18, [#allocation3], %s1664_s21, %s1664_s21, %s1665_s22  }
  0x30   : > { %s1570_s20 = scalar_lea.vmem %s293_s13, 2048  ;;  %p1578_p11 = scmp.lt.s32.totalorder %s293_s13, %s293_s13 }
  0x31   : > { %p1571_p8 = scmp.ne.s32.totalorder %s293_s13, %s1570_s20  ;;  %p1579_p12 = scmp.lt.s32.totalorder %s1570_s20, %s1570_s20 }
  0x33   : > { %p1573_p9 = pnand %p1571_p8, %p1752_p6  ;;  %p1580_p13 = por %p1579_p12, %p1578_p11 }
  0x35   : > { %p1574_p10 = pneg %p1573_p9 }
  0x37   : > { %p1581_p0 = pnand %p1580_p13, %p1574_p10 }
  0x39   : > { %1584 = shalt.err (!%p1581_p0)
}
  0x3a   : > { %1419 = dma.hbm_to_vmem [thread:$0]  (!%p1744_p5), %s1952_s5, 2048, %s293_s13, [#allocation5], %s1664_s21, %s1664_s21, %s1665_s22  }
  0x3b   : > { %s1669_s18 = smov [#allocation9]   ;;  %s1670_s26 = smov [#allocation10]  }
  0x3c   : > { %s319_s25 = sshll.u32 %s1669_s18, 4  ;;  %s329_s27 = sshll.u32 %s1670_s26, 4  ;;  %s320_s25 = int_to_ptr.vmem [resolvable:$true] %s319_s25  ;;  %s330_s27 = int_to_ptr.vmem [resolvable:$true] %s329_s27 }
  0x3d   : > { %s1596_s28 = scalar_lea.vmem %s320_s25, 128  ;;  %p1604_p8 = scmp.lt.s32.totalorder %s320_s25, %s320_s25 }
  0x3e   : > { %p1597_p1 = scmp.ne.s32.totalorder %s320_s25, %s1596_s28  ;;  %p1605_p9 = scmp.lt.s32.totalorder %s1596_s28, %s1596_s28 }
  0x40   : > { %p1599_p4 = pnand %p1597_p1, %p1752_p6  ;;  %p1606_p10 = por %p1605_p9, %p1604_p8 }
  0x42   : > { %p1600_p7 = pneg %p1599_p4 }
  0x44   : > { %p1607_p11 = pnand %p1606_p10, %p1600_p7 }
  0x46   : > { %1610 = shalt.err (!%p1607_p11)
}
  0x47   : > { %1425 = dma.hbm_to_vmem [thread:$0]  (!%p1744_p5), %s1954_s7, 128, %s320_s25, [#allocation8]  }
  0x48   : > { %s1622_s13 = scalar_lea.vmem %s330_s27, 2048  ;;  %p1630_p1 = scmp.lt.s32.totalorder %s330_s27, %s330_s27 }
  0x49   : > { %p1623_p12 = scmp.ne.s32.totalorder %s330_s27, %s1622_s13  ;;  %p1631_p4 = scmp.lt.s32.totalorder %s1622_s13, %s1622_s13 }
  0x4b   : > { %p1625_p13 = pnand %p1623_p12, %p1752_p6  ;;  %p1632_p2 = por %p1631_p4, %p1630_p1 }
  0x4d   : > { %p1626_p0 = pneg %p1625_p13 }
  0x4f   : > { %p1633_p3 = pnand %p1632_p2, %p1626_p0 }
  0x51   : > { %1636 = shalt.err (!%p1633_p3)
}
  0x52   : > { %1428 = dma.hbm_to_vmem [thread:$0]  (!%p1744_p5), %s1955_s8, 2048, %s330_s27, [#allocation11], %s1664_s21, %s1664_s21, %s1665_s22  }
  0x53   : > { %p1962_p7 = scmp.ne.s32.totalorder %s1959_s11, 0 }
  0x54   : > { %p1963_p6 = scmp.eq.s32.totalorder (!%p1962_p7), %s1729_s10, 0 }
  0x55   : > { %352 = sbr.rel (%p1962_p7) target bundleno = 1669 (0x685), region = 56 }
  0x5a   : > { %1642 = dma.done.wait (%p1963_p6), [#allocation3], 512   ;;  %p1964_p8 = pmov %p1963_p6 }
  0x5b   : > { %p1965_p2 = pmov %p1963_p6 }
  0x5c   : > { %1644 = vsyncadd (%p1964_p8), [#allocation3], 4294966784 }
  0x5d   : > { %1646 = dma.done.wait (%p1965_p2), [#allocation5], 4096   ;;  %p1966_p3 = pmov %p1965_p2 }
  0x5e   : > { %p1967_p9 = pmov %p1965_p2 }
  0x5f   : > { %1648 = vsyncadd (%p1966_p3), [#allocation5], 4294963200 }
  0x60   : > { %1650 = dma.done.wait (%p1967_p9), [#allocation8], 1152   ;;  %p1968_p5 = pmov %p1965_p2 }
  0x61   : > { %p1969_p10 = pmov %p1965_p2 }
  0x62   : > { %1652 = vsyncadd (%p1968_p5), [#allocation8], 4294966144 }
  0x63   : > { %1654 = dma.done.wait (%p1969_p10), [#allocation11], 2048   ;;  %p1970_p11 = pmov %p1965_p2 }
  0x64   : > { %p407_p12 = scmp.lt.s32.totalorder %s1729_s10, 1  ;;  %v1671_v0 = vmov 0.0   ;;  %vm1672_vm0 = vmmov 0   ;;  %v421_v1 = vld [vmem:[#allocation2 + $0x18] sm:$0xff]  ;;  %v420_v2 = vld [vmem:[#allocation2 + $0x10] sm:$0xff]  ;;  %v419_v3 = vld [vmem:[#allocation2 + $0x8] sm:$0xff] }
  0x65   : > { %1656 = vsyncadd (%p1970_p11), [#allocation11], 4294965248  ;;  %1215 = vmatprep.subr.mxu0 %v1671_v0  ;;  %1223 = vmatprep.mubr.msk.f32.mxu0 %vm1672_vm0, %v1671_v0  ;;  %v418_v4 = vld [vmem:[#allocation2] sm:$0xff]  ;;  %vm429_vm1 = vcmask 261120   ;;  %v519_v6 = vld [vmem:[#allocation4 + $0x78] sm:$0xff] }
  0x66   : > { %s1972_s10 = smov (!%p407_p12, %s1729_s10), 1  ;;  %1296 = vmatprep.subr.bf16.mxu1 %v1671_v0  ;;  %1312 = vmatprep.mubr.msk.bf16.mxu1 %vm1672_vm0, %v1671_v0  ;;  %v518_v7 = vld [vmem:[#allocation4 + $0x70] sm:$0xff]  ;;  %v517_v8 = vld [vmem:[#allocation4 + $0x68] sm:$0xff]  ;;  %v516_v9 = vld [vmem:[#allocation4 + $0x60] sm:$0xff] }
  0x67   : > { %s1114_s11 = sshll.u32 %s1972_s10, 3  ;;  %1216 = vmatpush3.msra.mxu0 %v421_v1  ;;  %v515_v10 = vld [vmem:[#allocation4 + $0x58] sm:$0xff]  ;;  %v514_v11 = vld [vmem:[#allocation4 + $0x50] sm:$0xff]  ;;  %v513_v12 = vld [vmem:[#allocation4 + $0x48] sm:$0xff]  ;;  %s1132_s20 = sshll.u32 %s1972_s10, 4 }
  0x68   : > { %1217 = vmatprep.subr.mxu0 %v1671_v0  ;;  %s410_s21 = scalar_lea.vmem %s1947_s0, %s1114_s11  ;;  %v512_v13 = vld [vmem:[#allocation4 + $0x40] sm:$0xff]  ;;  %v511_v14 = vld [vmem:[#allocation4 + $0x38] sm:$0xff]  ;;  %v510_v15 = vld [vmem:[#allocation4 + $0x30] sm:$0xff]  ;;  %s1889_s26 = scalar_lea.vmem %s1956_s9, %s1132_s20 }
  0x69   : > { %1218 = vmatpush3.msra.mxu0 %v420_v2  ;;  %v417_v5 = vld [vmem:[%s410_s21] sm:$0xff]  ;;  %v509_v16 = vld [vmem:[#allocation4 + $0x28] sm:$0xff]  ;;  %v507_v18 = vld [vmem:[#allocation4 + $0x18] sm:$0xff] }
  0x6a   : > { %1219 = vmatprep.subr.mxu0 %v1671_v0  ;;  %v508_v17 = vld [vmem:[#allocation4 + $0x20] sm:$0xff]  ;;  %v506_v19 = vld [vmem:[#allocation4 + $0x10] sm:$0xff]  ;;  %v505_v20 = vld [vmem:[#allocation4 + $0x8] sm:$0xff] }
  0x6b   : > { %1220 = vmatpush3.msra.mxu0 %v419_v3  ;;  %v504_v21 = vld [vmem:[#allocation4] sm:$0xff]  ;;  %v618_v27 = vld [vmem:[#allocation6 + $0x78] sm:$0xff]  ;;  %v617_v28 = vld [vmem:[#allocation6 + $0x70] sm:$0xff] }
  0x6c   : > { %1221 = vmatprep.subr.mxu0 %v1671_v0  ;;  %v1117_v22 = vld [vmem:[%s1949_s2] ss:$0 sm:$0xff]  ;;  %v616_v29 = vld [vmem:[#allocation6 + $0x68] sm:$0xff]  ;;  %v614_v31 = vld [vmem:[#allocation6 + $0x58] sm:$0xff] }
  0x6d   : > { %1222 = vmatpush3.msra.mxu0 %v418_v4  ;;  %v615_v30 = vld [vmem:[#allocation6 + $0x60] sm:$0xff]  ;;  %v613_v32 = vld [vmem:[#allocation6 + $0x50] sm:$0xff]  ;;  %v612_v33 = vld [vmem:[#allocation6 + $0x48] sm:$0xff] }
  0x6e   : > { %1224 = vmatmul.mubr.msk.f32.vlgmr.msra.gmra.mxu0 %vm429_vm1, %v417_v5  ;;  %1226 = vmatprep.subr.mxu0 %v1671_v0  ;;  %v1119_v34 = vld [vmem:[%s1951_s4] ss:$0 sm:$0xff]  ;;  %v610_v39 = vld [vmem:[#allocation6 + $0x38] sm:$0xff]  ;;  %v609_v40 = vld [vmem:[#allocation6 + $0x30] sm:$0xff] }
  0x6f   : > { %1227 = vmatpush3.msra.mxu0 %v519_v6  ;;  %1258 = vmatprep.mubr.msk.f32.mxu0 %vm1672_vm0, %v1671_v0  ;;  %v611_v38 = vld [vmem:[#allocation6 + $0x40] sm:$0xff]  ;;  %v608_v41 = vld [vmem:[#allocation6 + $0x28] sm:$0xff]  ;;  %v606_v43 = vld [vmem:[#allocation6 + $0x18] sm:$0xff] }
  0x70   : > { %1228 = vmatprep.subr.mxu0 %v1671_v0  ;;  %v607_v42 = vld [vmem:[#allocation6 + $0x20] sm:$0xff]  ;;  %v605_v44 = vld [vmem:[#allocation6 + $0x10] sm:$0xff]  ;;  %v604_v45 = vld [vmem:[#allocation6 + $0x8] sm:$0xff] }
  0x71   : > { %1229 = vmatpush3.msra.mxu0 %v518_v7  ;;  %v603_v46 = vld [vmem:[#allocation6] sm:$0xff]  ;;  %v1461_v47 = vld [vmem:[#allocation7 + $0x38] sm:$0xff]   ;;  %v1462_v48 = vld [vmem:[#allocation7 + $0x30] sm:$0xff]  }
  0x72   : > { %1230 = vmatprep.subr.mxu0 %v1671_v0  ;;  %1297 = vmatpush3.bf16.msra.mxu1 %v1461_v47  ;;  %v1463_v49 = vld [vmem:[#allocation7 + $0x28] sm:$0xff]   ;;  %v1464_v54 = vld [vmem:[#allocation7 + $0x20] sm:$0xff]   ;;  %v1465_v55 = vld [vmem:[#allocation7 + $0x18] sm:$0xff]  }
  0x73   : > { %1231 = vmatpush3.msra.mxu0 %v517_v8  ;;  %1298 = vmatprep.subr.bf16.mxu1 %v1671_v0  ;;  %v1466_v56 = vld [vmem:[#allocation7 + $0x10] sm:$0xff]   ;;  %v1467_v57 = vld [vmem:[#allocation7 + $0x8] sm:$0xff]   ;;  %v1468_v58 = vld [vmem:[#allocation7] sm:$0xff]  }
  0x74   : > { %1232 = vmatprep.subr.mxu0 %v1671_v0  ;;  %v824_v2 = vld [vmem:[#allocation10 + $0x78] sm:$0xff]  ;;  %v823_v3 = vld [vmem:[#allocation10 + $0x70] sm:$0xff]  ;;  %v822_v4 = vld [vmem:[#allocation10 + $0x68] sm:$0xff] }
  0x75   : > { %1233 = vmatpush3.msra.mxu0 %v516_v9  ;;  %v821_v5 = vld [vmem:[#allocation10 + $0x60] sm:$0xff]  ;;  %v820_v6 = vld [vmem:[#allocation10 + $0x58] sm:$0xff]  ;;  %v819_v7 = vld [vmem:[#allocation10 + $0x50] sm:$0xff] }
  0x76   : > { %1234 = vmatprep.subr.mxu0 %v1671_v0  ;;  %1299 = vmatpush3.bf16.msra.mxu1 %v1462_v48  ;;  %v818_v8 = vld [vmem:[#allocation10 + $0x48] sm:$0xff] }
  0x77   : > { %1235 = vmatpush3.msra.mxu0 %v515_v10  ;;  %1300 = vmatprep.subr.bf16.mxu1 %v1671_v0  ;;  %v1128_v10 = vld [vmem:[#allocation9 + $0x1] ss:$0 sm:$0xff] }
  0x78   : > { %1236 = vmatprep.subr.mxu0 %v1671_v0 }
  0x79   : > { %1237 = vmatpush3.msra.mxu0 %v514_v11 }
  0x7a   : > { %1238 = vmatprep.subr.mxu0 %v1671_v0  ;;  %1301 = vmatpush3.bf16.msra.mxu1 %v1463_v49 }
  0x7b   : > { %1239 = vmatpush3.msra.mxu0 %v513_v12  ;;  %1302 = vmatprep.subr.bf16.mxu1 %v1671_v0 }
  0x7c   : > { %1240 = vmatprep.subr.mxu0 %v1671_v0 }
  0x7d   : > { %1241 = vmatpush3.msra.mxu0 %v512_v13 }
  0x7e   : > { %1242 = vmatprep.subr.mxu0 %v1671_v0  ;;  %1303 = vmatpush3.bf16.msra.mxu1 %v1464_v54 }
  0x7f   : > { %1243 = vmatpush3.msra.mxu0 %v511_v14  ;;  %1304 = vmatprep.subr.bf16.mxu1 %v1671_v0 }
  0x80   : > { %1244 = vmatprep.subr.mxu0 %v1671_v0 }
  0x81   : > { %1245 = vmatpush3.msra.mxu0 %v510_v15 }
  0x82   : > { %1246 = vmatprep.subr.mxu0 %v1671_v0  ;;  %1305 = vmatpush3.bf16.msra.mxu1 %v1465_v55 }
  0x83   : > { %1247 = vmatpush3.msra.mxu0 %v509_v16  ;;  %1306 = vmatprep.subr.bf16.mxu1 %v1671_v0  ;;  %v817_v16 = vld [vmem:[#allocation10 + $0x40] sm:$0xff] }
  0x84   : > { %1248 = vmatprep.subr.mxu0 %v1671_v0 }
  0x85   : > { %1249 = vmatpush3.msra.mxu0 %v508_v17  ;;  %v816_v17 = vld [vmem:[#allocation10 + $0x38] sm:$0xff] }
  0x86   : > { %1250 = vmatprep.subr.mxu0 %v1671_v0  ;;  %1307 = vmatpush3.bf16.msra.mxu1 %v1466_v56 }
  0x87   : > { %1251 = vmatpush3.msra.mxu0 %v507_v18  ;;  %1308 = vmatprep.subr.bf16.mxu1 %v1671_v0  ;;  %v815_v18 = vld [vmem:[#allocation10 + $0x30] sm:$0xff] }
  0x88   : > { %1252 = vmatprep.subr.mxu0 %v1671_v0 }
  0x89   : > { %1253 = vmatpush3.msra.mxu0 %v506_v19  ;;  %v814_v19 = vld [vmem:[#allocation10 + $0x28] sm:$0xff] }
  0x8a   : > { %1254 = vmatprep.subr.mxu0 %v1671_v0  ;;  %1309 = vmatpush3.bf16.msra.mxu1 %v1467_v57 }
  0x8b   : > { %1255 = vmatpush3.msra.mxu0 %v505_v20  ;;  %1310 = vmatprep.subr.bf16.mxu1 %v1671_v0  ;;  %v813_v20 = vld [vmem:[#allocation10 + $0x20] sm:$0xff] }
  0x8c   : > { %1256 = vmatprep.subr.mxu0 %v1671_v0 }
  0x8d   : > { %1257 = vmatpush3.msra.mxu0 %v504_v21  ;;  %v812_v21 = vld [vmem:[#allocation10 + $0x18] sm:$0xff] }
  0x8e   : > { %1261 = vmatprep.subr.mxu0 %v1671_v0  ;;  %1311 = vmatpush3.bf16.msra.mxu1 %v1468_v58 }
  0x8f   : > { %1351 = vmatprep.subr.mxu1 %v1671_v0 }
 0x12e   : > { %v499_v23 = vpop.f32.mrf.mxu0 }
 0x12f   : > { %v500_v24 = vadd.f32 %v1117_v22, %v499_v23  ;;  %v811_v22 = vld [vmem:[#allocation10 + $0x10] sm:$0xff]  ;;  %v810_v23 = vld [vmem:[#allocation10 + $0x8] sm:$0xff] }
 0x130   : > { %v1225_v25 = vpop.f32.mrf.mxu0 }
 0x131   : > { %v503_v26 = vmax.f32 %v500_v24, 0.0  ;;  %v809_v24 = vld [vmem:[#allocation10] sm:$0xff] }
 0x133   : > { %1259 = vmatmul.mubr.f32.vlgmr.msra.gmra.mxu0 %v503_v26 }
 0x134   : > { %1293 = vmatprep.mubr.msk.f32.mxu0 %vm1672_vm0, %v1671_v0  ;;  %1262 = vmatpush3.msra.mxu0 %v618_v27 }
 0x135   : > { %1263 = vmatprep.subr.mxu0 %v1671_v0 }
 0x136   : > { %1264 = vmatpush3.msra.mxu0 %v617_v28 }
 0x137   : > { %1265 = vmatprep.subr.mxu0 %v1671_v0 }
 0x138   : > { %1266 = vmatpush3.msra.mxu0 %v616_v29 }
 0x139   : > { %1267 = vmatprep.subr.mxu0 %v1671_v0 }
 0x13a   : > { %1268 = vmatpush3.msra.mxu0 %v615_v30 }
 0x13b   : > { %1269 = vmatprep.subr.mxu0 %v1671_v0 }
 0x13c   : > { %1270 = vmatpush3.msra.mxu0 %v614_v31 }
 0x13d   : > { %1271 = vmatprep.subr.mxu0 %v1671_v0 }
 0x13e   : > { %1272 = vmatpush3.msra.mxu0 %v613_v32 }
 0x13f   : > { %1273 = vmatprep.subr.mxu0 %v1671_v0 }
 0x140   : > { %1274 = vmatpush3.msra.mxu0 %v612_v33 }
 0x141   : > { %1275 = vmatprep.subr.mxu0 %v1671_v0 }
 0x142   : > { %1276 = vmatpush3.msra.mxu0 %v611_v38 }
 0x143   : > { %1277 = vmatprep.subr.mxu0 %v1671_v0 }
 0x144   : > { %1278 = vmatpush3.msra.mxu0 %v610_v39 }
 0x145   : > { %1279 = vmatprep.subr.mxu0 %v1671_v0 }
 0x146   : > { %1280 = vmatpush3.msra.mxu0 %v609_v40 }
 0x147   : > { %1281 = vmatprep.subr.mxu0 %v1671_v0 }
 0x148   : > { %1282 = vmatpush3.msra.mxu0 %v608_v41 }
 0x149   : > { %1283 = vmatprep.subr.mxu0 %v1671_v0 }
 0x14a   : > { %1284 = vmatpush3.msra.mxu0 %v607_v42 }
 0x14b   : > { %1285 = vmatprep.subr.mxu0 %v1671_v0 }
 0x14c   : > { %1286 = vmatpush3.msra.mxu0 %v606_v43 }
 0x14d   : > { %1287 = vmatprep.subr.mxu0 %v1671_v0 }
 0x14e   : > { %1288 = vmatpush3.msra.mxu0 %v605_v44 }
 0x14f   : > { %1289 = vmatprep.subr.mxu0 %v1671_v0 }
 0x150   : > { %1290 = vmatpush3.msra.mxu0 %v604_v45 }
 0x151   : > { %1291 = vmatprep.subr.mxu0 %v1671_v0 }
 0x152   : > { %1292 = vmatpush3.msra.mxu0 %v603_v46 }
 0x153   : > { %1316 = vmatprep.subr.mxu0 %v1671_v0 }
 0x1f3   : > { %v593_v35 = vpop.f32.mrf.mxu0 }
 0x1f4   : > { %v594_v36 = vadd.f32 %v1119_v34, %v593_v35  ;;  %v1129_v34 = vld [vmem:[#allocation9] ss:$0 sm:$0xff] }
 0x1f5   : > { %v1260_v37 = vpop.f32.mrf.mxu0 }
 0x1f6   : > { %597 = vst [vmem:[%s1889_s26] sm:$0xff] %v594_v36  ;;  %598 = vmax.xlane.f32.xlu0 %v594_v36 }
 0x27f   : > { %v599_v50 = vpop.xlane.xlu0 %598 }
 0x280   : > { %v600_v51 = vsub.f32 %v594_v36, %v599_v50 }
 0x282   : > { %v601_v52 = vmul.f32 1.442695, %v600_v51 }
 0x284   : > { %1469 = vpow2.f32 %v601_v52 }
 0x291   : > { %v1470_v53 = vpop.eup %1469 }
 0x292   : > { %1294 = vmatmul.mubr.f32.vlgmr.msra.gmra.mxu0 %v1470_v53 }
 0x293   : > { %1348 = vmatprep.mubr.msk.f32.mxu0 %vm1672_vm0, %v1671_v0  ;;  %1317 = vmatpush3.msra.mxu0 %v824_v2 }
 0x294   : > { %1318 = vmatprep.subr.mxu0 %v1671_v0 }
 0x295   : > { %1319 = vmatpush3.msra.mxu0 %v823_v3 }
 0x296   : > { %1320 = vmatprep.subr.mxu0 %v1671_v0 }
 0x297   : > { %1321 = vmatpush3.msra.mxu0 %v822_v4 }
 0x298   : > { %1322 = vmatprep.subr.mxu0 %v1671_v0 }
 0x299   : > { %1323 = vmatpush3.msra.mxu0 %v821_v5 }
 0x29a   : > { %1324 = vmatprep.subr.mxu0 %v1671_v0 }
 0x29b   : > { %1325 = vmatpush3.msra.mxu0 %v820_v6 }
 0x29c   : > { %1326 = vmatprep.subr.mxu0 %v1671_v0 }
 0x29d   : > { %1327 = vmatpush3.msra.mxu0 %v819_v7 }
 0x29e   : > { %1328 = vmatprep.subr.mxu0 %v1671_v0 }
 0x29f   : > { %1329 = vmatpush3.msra.mxu0 %v818_v8 }
 0x2a0   : > { %1330 = vmatprep.subr.mxu0 %v1671_v0 }
 0x2a1   : > { %1331 = vmatpush3.msra.mxu0 %v817_v16 }
 0x2a2   : > { %1332 = vmatprep.subr.mxu0 %v1671_v0 }
 0x2a3   : > { %1333 = vmatpush3.msra.mxu0 %v816_v17 }
 0x2a4   : > { %1334 = vmatprep.subr.mxu0 %v1671_v0 }
 0x2a5   : > { %1335 = vmatpush3.msra.mxu0 %v815_v18 }
 0x2a6   : > { %1336 = vmatprep.subr.mxu0 %v1671_v0 }
 0x2a7   : > { %1337 = vmatpush3.msra.mxu0 %v814_v19 }
 0x2a8   : > { %1338 = vmatprep.subr.mxu0 %v1671_v0 }
 0x2a9   : > { %1339 = vmatpush3.msra.mxu0 %v813_v20 }
 0x2aa   : > { %1340 = vmatprep.subr.mxu0 %v1671_v0 }
 0x2ab   : > { %1341 = vmatpush3.msra.mxu0 %v812_v21 }
 0x2ac   : > { %1342 = vmatprep.subr.mxu0 %v1671_v0 }
 0x2ad   : > { %1343 = vmatpush3.msra.mxu0 %v811_v22 }
 0x2ae   : > { %1344 = vmatprep.subr.mxu0 %v1671_v0 }
 0x2af   : > { %1345 = vmatpush3.msra.mxu0 %v810_v23 }
 0x2b0   : > { %1346 = vmatprep.subr.mxu0 %v1671_v0 }
 0x2b1   : > { %1347 = vmatpush3.msra.mxu0 %v809_v24 }
 0x352   : > { %v685_v59 = vpop.f32.mrf.mxu0 }
 0x353   : > { %v689_v60 = vmax.f32 %v685_v59, 1e-30 }
 0x354   : > { %v1295_v61 = vpop.f32.mrf.mxu0 }
 0x355   : > { %1471 = vrcp.f32 %v689_v60 }
 0x362   : > { %v1472_v62 = vpop.eup %1471 }
 0x363   : > { %v691_v63 = vmul.f32 %v1472_v62, %v1470_v53 }
 0x365   : > { %v692_v1 = vpack.c.bf16 %v691_v63, %v691_v63 }
 0x367   : > { %1313 = vmatmul.mubr.bf16.vlgmr.msra.gmra.mxu1 %v692_v1 }
 0x368   : > { %1383 = vmatprep.mubr.msk.f32.mxu1 %vm1672_vm0, %v1671_v0  ;;  %1352 = vmatpush3.xpose.msra.mxu1 %v824_v2 }
 0x369   : > { %1353 = vmatprep.subr.mxu1 %v1671_v0 }
 0x36c   : > { %1354 = vmatpush3.xpose.msra.mxu1 %v823_v3 }
 0x36d   : > { %1355 = vmatprep.subr.mxu1 %v1671_v0 }
 0x370   : > { %1356 = vmatpush3.xpose.msra.mxu1 %v822_v4 }
 0x371   : > { %1357 = vmatprep.subr.mxu1 %v1671_v0 }
 0x374   : > { %1358 = vmatpush3.xpose.msra.mxu1 %v821_v5 }
 0x375   : > { %1359 = vmatprep.subr.mxu1 %v1671_v0 }
 0x378   : > { %1360 = vmatpush3.xpose.msra.mxu1 %v820_v6 }
 0x379   : > { %1361 = vmatprep.subr.mxu1 %v1671_v0 }
 0x37c   : > { %1362 = vmatpush3.xpose.msra.mxu1 %v819_v7 }
 0x37d   : > { %1363 = vmatprep.subr.mxu1 %v1671_v0 }
 0x380   : > { %1364 = vmatpush3.xpose.msra.mxu1 %v818_v8 }
 0x381   : > { %1365 = vmatprep.subr.mxu1 %v1671_v0 }
 0x384   : > { %1366 = vmatpush3.xpose.msra.mxu1 %v817_v16 }
 0x385   : > { %1367 = vmatprep.subr.mxu1 %v1671_v0 }
 0x388   : > { %1368 = vmatpush3.xpose.msra.mxu1 %v816_v17 }
 0x389   : > { %1369 = vmatprep.subr.mxu1 %v1671_v0 }
 0x38c   : > { %1370 = vmatpush3.xpose.msra.mxu1 %v815_v18 }
 0x38d   : > { %1371 = vmatprep.subr.mxu1 %v1671_v0 }
 0x390   : > { %1372 = vmatpush3.xpose.msra.mxu1 %v814_v19 }
 0x391   : > { %1373 = vmatprep.subr.mxu1 %v1671_v0 }
 0x394   : > { %1374 = vmatpush3.xpose.msra.mxu1 %v813_v20 }
 0x395   : > { %1375 = vmatprep.subr.mxu1 %v1671_v0 }
 0x398   : > { %1376 = vmatpush3.xpose.msra.mxu1 %v812_v21 }
 0x399   : > { %1377 = vmatprep.subr.mxu1 %v1671_v0 }
 0x39c   : > { %1378 = vmatpush3.xpose.msra.mxu1 %v811_v22 }
 0x39d   : > { %1379 = vmatprep.subr.mxu1 %v1671_v0 }
 0x3a0   : > { %1380 = vmatpush3.xpose.msra.mxu1 %v810_v23 }
 0x3a1   : > { %1381 = vmatprep.subr.mxu1 %v1671_v0 }
 0x3a4   : > { %1382 = vmatpush3.xpose.msra.mxu1 %v809_v24 }
 0x427   : > { %v791_v9 = vpop.f32.mrf.mxu1 }
 0x428   : > { %v797_v11 = vmul.f32 2.0, %v791_v9 }
 0x429   : > { %v1314_v12 = vpop.f32.mrf.mxu1 }
 0x42a   : > { %v803_v13 = vadd.f32 %v1128_v10, %v797_v11 }
 0x42b   : > { %v794_v14 = vpop.f32.mrf.mxu1 }
 0x42c   : > { %804 = vmax.xlane.f32.xlu0 %v803_v13 }
 0x42d   : > { %v1315_v15 = vpop.f32.mrf.mxu1 }
 0x4b5   : > { %v805_v25 = vpop.xlane.xlu0 %804 }
 0x4b6   : > { %v806_v26 = vsub.f32 %v803_v13, %v805_v25 }
 0x4b8   : > { %v807_v27 = vmul.f32 1.442695, %v806_v26 }
 0x4ba   : > { %1473 = vpow2.f32 %v807_v27 }
 0x4c7   : > { %v1474_v28 = vpop.eup %1473 }
 0x4c8   : > { %1349 = vmatmul.mubr.f32.vlgmr.msra.gmra.mxu0 %v1474_v28 }
 0x588   : > { %v891_v29 = vpop.f32.mrf.mxu0 }
 0x589   : > { %v895_v30 = vmax.f32 %v891_v29, 1e-30 }
 0x58a   : > { %v1350_v31 = vpop.f32.mrf.mxu0 }
 0x58b   : > { %1475 = vrcp.f32 %v895_v30 }
 0x598   : > { %v1476_v32 = vpop.eup %1475 }
 0x599   : > { %v897_v33 = vmul.f32 %v1476_v32, %v1474_v28 }
 0x59b   : > { %v898_v35 = vmin.f32 %v897_v33, 1.0 }
 0x59d   : > { %v904_v36 = vmul.f32 %v1129_v34, %v898_v35 }
 0x59f   : > { %v905_v37 = vsub.f32 1.0, %v904_v36 }
 0x5a1   : > { %v906_v38 = vmax.f32 %v905_v37, 1e-30 }
 0x5a3   : > { %1477 = vlog2.f32 %v906_v38 }
 0x5b0   : > { %v1478_v0 = vpop.eup %1477 }
 0x5b1   : > { %v908_v39 = vmul.f32 0.6931472, %v1478_v0 }
 0x5b3   : > { %1384 = vmatmul.mubr.f32.vlgmr.msra.gmra.mxu1 %v908_v39 }
 0x673   : > { %v975_v40 = vpop.f32.mrf.mxu1 }
 0x674   : > { %v979_v41 = vmul.f32 1.442695, %v975_v40 }
 0x675   : > { %v1385_v42 = vpop.f32.mrf.mxu1 }
 0x676   : > { %1479 = vpow2.f32 %v979_v41 }
 0x683   : > { %v1480_v43 = vpop.eup %1479 }
 0x684   : > { %981 = vst [vmem:[%s1889_s26 + $0x8] sm:$0xff] %v1480_v43 }
 0x685 PF: > { %s23_s30 = sadd.s32 1, %s1659_s30  }
 0x686   : > { %p20_p13 = scmp.ge.s32.totalorder %s23_s30, 4  }
 0x688   :  { %22 = sbr.rel (!%p20_p13) target bundleno = 4 (0x4), region = 111 }
 0x68d   :  { %1003 = vsyncpa [#allocation3], 1 }
 0x68e   :  { %1005 = vsyncpa [#allocation3 + $0x1], 1 }
 0x68f   :  { %1006 = vsyncpa [#allocation5], 1 }
 0x690   :  { %1007 = vsyncpa [#allocation8], 1 }
 0x691   :  { %1008 = vsyncpa [#allocation11], 1 }

</bundles_post_ra>
